<compile_context>
chip_gen: v7x
topology: tpu7x:2x2x1
jax: 0.10.0
libtpu: 0.0.40
codegen_flags: <defaults>
</compile_context>

<pallas_src>
import functools

import jax
import jax.numpy as jnp
from jax.experimental import pallas as pl
from jax.experimental.pallas import tpu as pltpu


_SMALL_BYTES = 1 << 21                 # <= 2 MiB: single whole-array block, no grid
_MIN_LANES = 128                       # lane width of a vreg
_LANE_CANDIDATES = (1024, 512, 2048, 256, 4096, 128, 8192)


def _silu_kernel(x_ref, o_ref, *, compute_dtype):
    """Elementwise x * sigmoid(x) on one lane-dense VMEM tile.

    Uses the exact identity silu(x) = 0.5 * x * (1 + tanh(0.5 * x)):
    one EUP transcendental per element, bounded (no inf/NaN for large |x|).
    """
    x = x_ref[...].astype(compute_dtype)
    half = jnp.asarray(0.5, dtype=compute_dtype)
    one = jnp.asarray(1.0, dtype=compute_dtype)
    o_ref[...] = (half * x * (one + jnp.tanh(half * x))).astype(o_ref.dtype)


def _device_kind():
    try:
        return jax.devices()[0].device_kind.lower()
    except Exception:
        return ""


def _resolve_compute_dtype(x_dtype, override):
    """bf16 natively on v6e/v7x (bf16 VPU+EUP); f32 everywhere else.

    Pass `compute_dtype=` explicitly for AOT/mock compilation where the device
    query is not meaningful.
    """
    if override is not None:
        return jnp.dtype(override)
    x_dtype = jnp.dtype(x_dtype)
    if x_dtype == jnp.dtype(jnp.float32):
        return jnp.float32
    if x_dtype == jnp.dtype(jnp.bfloat16):
        kind = _device_kind()
        if "v6" in kind or "v7" in kind:
            return jnp.bfloat16
    return jnp.float32   # v5e and older: no bf16 VPU/EUP -> compute in f32


def _tile_params():
    """Generation-aware (block_bytes, vmem_limit_bytes) for the tiled path."""
    kind = _device_kind()
    if "v7" in kind:
        # ~3.2 TB/s per TC: big blocks amortise the ~0.35us per-step overhead.
        # 2 bufs x (in + out) x 8 MiB = 32 MiB; 40 MiB leaves headroom under
        # v7x's 64 MiB physical VMEM.
        return 8 << 20, 40 << 20
    if "v6" in kind:
        # throughput plateaus (~85% of HBM roofline) only with large blocks.
        return 6 << 20, 30 << 20
    # v5e / unknown: scoped-VMEM default is 16 MiB -> keep 4 x tile well inside.
    return 2 << 20, None


def _choose_layout(total):
    """Lane-dense (rows, lanes) factorization of `total` (total % 128 == 0)."""
    for lanes in _LANE_CANDIDATES:
        if total % lanes == 0:
            return total // lanes, lanes
    return total // _MIN_LANES, _MIN_LANES   # always valid: total % 128 == 0


def _silu_pallas_2d(x2d, compute_dtype, donate):
    """Run the SiLU kernel over a 2D slab; returns a 2D array of same shape."""
    rows, lanes = x2d.shape
    dtype = x2d.dtype
    itemsize = jnp.dtype(dtype).itemsize
    total = rows * lanes

    kernel = functools.partial(_silu_kernel, compute_dtype=compute_dtype)
    out_shape = jax.ShapeDtypeStruct((rows, lanes), dtype)
    aliases = {0: 0} if donate else {}
    cost = pl.CostEstimate(flops=4 * total, transcendentals=total,
                           bytes_accessed=2 * total * itemsize)

    if total * itemsize <= _SMALL_BYTES:
        # Whole array in a single VMEM block: no grid / pipelining overhead.
        # Full-array block shapes are exempt from the (8,128) divisibility rule.
        return pl.pallas_call(
            kernel,
            out_shape=out_shape,
            in_specs=[pl.BlockSpec(memory_space=pltpu.MemorySpace.VMEM)],
            out_specs=pl.BlockSpec(memory_space=pltpu.MemorySpace.VMEM),
            input_output_aliases=aliases,
            cost_estimate=cost,
        )(x2d)

    tile_bytes, vmem_limit = _tile_params()
    target_rows = max(8, tile_bytes // (lanes * itemsize))
    # At least 2 (and an even number of) grid steps so both v7x TensorCores
    # get work and the load stays balanced across them.
    n_steps = max(2, pl.cdiv(rows, target_rows))
    if n_steps % 2:
        n_steps += 1
    row_tile = ((pl.cdiv(rows, n_steps) + 7) // 8) * 8   # multiple of 8 sublanes

    cp_kwargs = {"dimension_semantics": ("parallel",)}
    if vmem_limit is not None:
        cp_kwargs["vmem_limit_bytes"] = vmem_limit

    return pl.pallas_call(
        kernel,
        out_shape=out_shape,
        grid=(pl.cdiv(rows, row_tile),),
        in_specs=[pl.BlockSpec((row_tile, lanes), lambda i: (i, 0))],
        out_specs=pl.BlockSpec((row_tile, lanes), lambda i: (i, 0)),
        input_output_aliases=aliases,
        cost_estimate=cost,
        compiler_params=pltpu.CompilerParams(**cp_kwargs),
    )(x2d)


def lambda_layer(x, *, compute_dtype=None, donate_input=False):
    """Pallas TPU implementation of LambdaLayer(lambda x: x * sigmoid(x)).

    Works for any shape / float dtype; returns same shape and dtype.
    """
    orig_shape = x.shape
    total = x.size
    if total == 0:
        return x
    dtype = x.dtype
    cdt = _resolve_compute_dtype(dtype, compute_dtype)
    flat = x.reshape(-1)

    main = (total // _MIN_LANES) * _MIN_LANES
    if main == 0:
        # Tiny (<128 elements): one whole-array VMEM block.
        out2d = _silu_pallas_2d(flat.reshape(1, total), cdt, donate_input)
        return out2d.reshape(orig_shape)

    rows, lanes = _choose_layout(main)
    main_out = _silu_pallas_2d(
        flat[:main].reshape(rows, lanes), cdt,
        donate_input and main == total,
    ).reshape(-1)
    if main == total:
        return main_out.reshape(orig_shape)

    # <128-element ragged tail: handled with plain jnp instead of padding the
    # whole array (which would add two extra full-array HBM passes).
    tail = flat[main:].astype(cdt)
    tail_out = (tail * jax.nn.sigmoid(tail)).astype(dtype)
    return jnp.concatenate([main_out, tail_out]).reshape(orig_shape)


def _reference(x):
    xf = x.astype(jnp.float32)
    return (xf * jax.nn.sigmoid(xf)).astype(x.dtype)


if __name__ == "__main__":
    key = jax.random.PRNGKey(0)
    k0, k1 = jax.random.split(key)

    # Primary test: NCHW activation, lane-aligned total (2*4*16*16 = 2048).
    x = jax.random.normal(k0, (2, 4, 16, 16), dtype=jnp.float32)
    out = jax.block_until_ready(lambda_layer(x))
    ref = _reference(x)
    assert out.shape == x.shape and out.dtype == x.dtype
    assert jnp.allclose(out, ref, atol=1e-4, rtol=1e-4), float(
        jnp.max(jnp.abs(out - ref)))

    # Secondary test: non-128-divisible size (main slab + jnp tail path).
    x2 = jax.random.normal(k1, (9, 127), dtype=jnp.float32)
    out2 = jax.block_until_ready(lambda_layer(x2))
    ref2 = _reference(x2)
    assert out2.shape == x2.shape and out2.dtype == x2.dtype
    assert jnp.allclose(out2, ref2, atol=1e-4, rtol=1e-4), float(
        jnp.max(jnp.abs(out2 - ref2)))

    print("KERNEL_OK")
</pallas_src>

<mosaic_0001>
module attributes {stable_mosaic.version = 11 : i64} {
  func.func @_silu_kernel(%arg0: memref<2x1024xf32, #tpu.memory_space<vmem>>, %arg1: memref<2x1024xf32, #tpu.memory_space<vmem>>) attributes {dimension_semantics = [], scalar_prefetch = 0 : i64, scratch_operands = 0 : i64, tpu.core_type = #tpu.core_type<tc>} {
    %c0 = arith.constant 0 : index
    %c0_0 = arith.constant 0 : index
    %0 = vector.load %arg0[%c0, %c0_0] : memref<2x1024xf32, #tpu.memory_space<vmem>>, vector<2x1024xf32>
    %cst = arith.constant 5.000000e-01 : f32
    %1 = vector.broadcast %cst : f32 to vector<2x1024xf32>
    %2 = arith.mulf %1, %0 : vector<2x1024xf32>
    %cst_1 = arith.constant 5.000000e-01 : f32
    %3 = vector.broadcast %cst_1 : f32 to vector<2x1024xf32>
    %4 = arith.mulf %3, %0 : vector<2x1024xf32>
    %5 = math.tanh %4 : vector<2x1024xf32>
    %cst_2 = arith.constant 1.000000e+00 : f32
    %6 = vector.broadcast %cst_2 : f32 to vector<2x1024xf32>
    %7 = arith.addf %6, %5 : vector<2x1024xf32>
    %8 = arith.mulf %2, %7 : vector<2x1024xf32>
    %c0_3 = arith.constant 0 : index
    %c0_4 = arith.constant 0 : index
    %9 = vector.load %arg1[%c0_3, %c0_4] : memref<2x1024xf32, #tpu.memory_space<vmem>>, vector<2x1024xf32>
    tpu.vector_store %arg1[%c0_3, %c0_4], %8 {strides = array<i32>} : memref<2x1024xf32, #tpu.memory_space<vmem>>, vector<2x1024xf32>,
    return
  }
}

</mosaic_0001>

<bundles_post_ra>
// kernel: tpu_custom_call.1
= control target key start
LH: loop header
LB: loop body
LE: loop exit
PB: predicated region body
PF: predicated region fallthrough
CT: control target
= control target key end

     0   :  { %6 = vsyncpa [#allocation3], 0  ;;  %s138_s0 = inlined_call_operand.hbm [shape: f32[2,1024], index: 0, kind: input, shape index: {}]   ;;  %s139_s1 = inlined_call_operand.hbm [shape: f32[2,1024], index: 1, kind: output, shape index: {}]  }
   0x1   :  { %7 = vsyncpa [#allocation4], 0  ;;  %s102_s6 = smov [#allocation2]   ;;  %s54_s10 = scalar_lea.hbm %s138_s0, 256 }
   0x2   :  { %s14_s7 = sshll.u32 %s102_s6, 4  ;;  %p55_p0 = scmp.ne.s32.totalorder %s138_s0, %s54_s10  ;;  %s15_s7 = int_to_ptr.vmem [resolvable:$true] %s14_s7 }
   0x3   :  { %p58_p1 = scmp.lt.u32.totalorder %s54_s10, %s138_s0 }
   0x5   :  { %p60_p2 = pnand %p58_p1, %p55_p0 }
   0x7   :  { %63 = shalt.err (!%p60_p2)
}
   0x8   :  { %s64_s15 = scalar_lea.vmem %s15_s7, 256  ;;  %p69_p4 = scmp.lt.s32.totalorder %s15_s7, %s15_s7 }
   0x9   :  { %p65_p3 = scmp.ne.s32.totalorder %s15_s7, %s64_s15  ;;  %p70_p5 = scmp.lt.s32.totalorder %s64_s15, %s64_s15 }
   0xb   :  { %p71_p6 = por %p70_p5, %p69_p4 }
   0xd   :  { %p72_p7 = pnand %p71_p6, %p65_p3 }
   0xf   :  { %75 = shalt.err (!%p72_p7)
}
  0x10   :  { %17 = dma.hbm_to_vmem [thread:$0]  %s138_s0, 256, %s15_s7, [#allocation3]  }
  0x11   :  { %98 = dma.done.wait [#allocation3], 256  }
  0x12   :  { %99 = vsyncadd [#allocation3], 4294967040  ;;  %v21_v0 = vld [vmem:[#allocation2] sm:$0xff]  ;;  %v22_v1 = vld [vmem:[#allocation2 + $0x8] sm:$0xff]  ;;  %s103_s18 = smov [#allocation5]  }
  0x13   :  { %v23_v2 = vmul.f32 0.5, %v21_v0  ;;  %v24_v3 = vmul.f32 0.5, %v22_v1  ;;  %s39_s19 = sshll.u32 %s103_s18, 4  ;;  %s40_s19 = int_to_ptr.vmem [resolvable:$true] %s39_s19 }
  0x14   :  { %s76_s0 = scalar_lea.vmem %s40_s19, 256  ;;  %p81_p9 = scmp.lt.s32.totalorder %s40_s19, %s40_s19 }
  0x15   :  { %50 = vtanh.f32 %v23_v2  ;;  %p77_p8 = scmp.ne.s32.totalorder %s40_s19, %s76_s0  ;;  %p82_p10 = scmp.lt.s32.totalorder %s76_s0, %s76_s0 }
  0x16   :  { %52 = vtanh.f32 %v24_v3 }
  0x17   :  { %p83_p11 = por %p82_p10, %p81_p9 }
  0x19   :  { %p84_p12 = pnand %p83_p11, %p77_p8 }
  0x1f   :  { %v51_v4 = vpop.eup %50 }
  0x20   :  { %v53_v5 = vpop.eup %52  ;;  %v27_v6 = vadd.f32 1.0, %v51_v4 }
  0x21   :  { %v28_v7 = vadd.f32 1.0, %v53_v5 }
  0x22   :  { %v29_v8 = vmul.f32 %v27_v6, %v23_v2 }
  0x23   :  { %v30_v9 = vmul.f32 %v28_v7, %v24_v3 }
  0x24   :  { %31 = vst [vmem:[#allocation5] sm:$0xff] %v29_v8 }
  0x25   :  { %32 = vst [vmem:[#allocation5 + $0x8] sm:$0xff] %v30_v9 }
  0x26   :  { %87 = shalt.err (!%p84_p12)
}
  0x27   :  { %s88_s22 = scalar_lea.hbm %s139_s1, 256 }
  0x28   :  { %p89_p13 = scmp.ne.s32.totalorder %s139_s1, %s88_s22  ;;  %p92_p0 = scmp.lt.u32.totalorder %s88_s22, %s139_s1 }
  0x2a   :  { %p94_p1 = pnand %p92_p0, %p89_p13 }
  0x2c   :  { %97 = shalt.err (!%p94_p1)
}
  0x2d   :  { %42 = dma.vmem_to_hbm [thread:$0]  %s40_s19, 256, %s139_s1, [#allocation4]  }
  0x2e   :  { %100 = dma.done.wait [#allocation4], 256  }
  0x2f   :  { %101 = vsyncadd [#allocation4], 4294967040 }
  0x30   :  { %46 = vsyncpa [#allocation3], 1 }
  0x31   :  { %47 = vsyncpa [#allocation4], 1 }

</bundles_post_ra>
